<compile_context>
chip_gen: v5e
topology: v5e:2x2
jax: 0.10.0
libtpu: 0.0.40
codegen_flags: <defaults>
</compile_context>

<pallas_src>
import jax
import jax.numpy as jnp
from jax.experimental import pallas as pl
from jax.experimental.pallas import tpu as pltpu


def _affine_kernel(x_ref, scale_ref, bias_ref, out_ref):
    # x_ref:     (R_blk, L_blk) slab of the flattened input
    # scale_ref: (R_blk, 1) or (1, L_blk) f32 params (jnp broadcasting handles both)
    # bias_ref:  same shape as scale_ref
    x = x_ref[...].astype(jnp.float32)
    out_ref[...] = (x * scale_ref[...] + bias_ref[...]).astype(out_ref.dtype)


def _chip_config():
    """Return (per-tile byte budget, vmem_limit_bytes or None, two_core)."""
    kind = ""
    try:
        kind = jax.devices()[0].device_kind.lower()
    except Exception:
        pass
    if "v7" in kind or "7x" in kind:
        # 6 MiB tiles -> in+out double-buffered ~24 MiB; raise scoped VMEM
        # (default 32 MiB) with headroom, well under the 64 MiB physical VMEM.
        return 6 * 1024 * 1024, 48 << 20, True
    if "v6" in kind:
        # 4 MiB tiles -> ~16 MiB double-buffered; inside the 32 MiB default.
        return 4 * 1024 * 1024, None, False
    # v5e / unknown: keep in+out double-buffered under the 16 MiB default.
    return 2 * 1024 * 1024, None, False


def _choose_tiles(rows, lanes, itemsize, budget_bytes, two_core):
    """Pick (row_block, lane_block): lane-dense first, rows from the budget."""
    budget_elems = max(budget_bytes // itemsize, 8 * 128)

    # 1) Lanes first: full extent if it fits alongside >= 8 rows, otherwise a
    #    large multiple of 128 (trailing partial column block is fine).
    if lanes * 8 <= budget_elems:
        l_blk = lanes
    else:
        l_blk = max(128, (budget_elems // 8) // 128 * 128)

    # 2) Rows from the remaining budget, as a multiple of 8; the last row block
    #    may be ragged (cdiv grid + Pallas padding handles it).
    r_fit = max(budget_elems // max(l_blk, 1), 8)
    if rows <= r_fit:
        r_blk = rows  # full dim is always a valid block shape
    else:
        r_blk = max(8, (r_fit // 8) * 8)

    # 3) On 2-TensorCore chips (v7x) make sure a non-trivial tensor is split
    #    into at least 2 blocks along a "parallel" axis.
    if two_core:
        n_blocks = (-(-rows // r_blk)) * (-(-lanes // l_blk))
        if n_blocks == 1:
            if rows >= 16:
                r_blk = (((rows + 1) // 2) + 7) // 8 * 8
            elif lanes >= 256:
                l_blk = (((lanes + 1) // 2) + 127) // 128 * 128

    return r_blk, l_blk


def _affine_pallas(x2, scale2, bias2, per_row):
    """out = x2 * scale2 + bias2 with broadcasting, tiled over a 2-D grid."""
    rows, lanes = x2.shape
    itemsize = jnp.dtype(x2.dtype).itemsize
    budget, vmem_limit, two_core = _chip_config()
    r_blk, l_blk = _choose_tiles(rows, lanes, itemsize, budget, two_core)
    grid = (pl.cdiv(rows, r_blk), pl.cdiv(lanes, l_blk))

    if per_row:
        param_spec = pl.BlockSpec((r_blk, 1), lambda i, j: (i, 0))
    else:
        param_spec = pl.BlockSpec((1, l_blk), lambda i, j: (0, j))

    cp_kwargs = dict(dimension_semantics=("parallel", "parallel"))
    if vmem_limit is not None:
        cp_kwargs["vmem_limit_bytes"] = vmem_limit

    cost = pl.CostEstimate(
        flops=2 * rows * lanes,
        transcendentals=0,
        bytes_accessed=2 * rows * lanes * itemsize + 4 * (scale2.size + bias2.size),
    )

    # TODO(synk): pass input_output_aliases={0: 0} when the caller donates x
    # (not done by default: x may be a saved residual for the flow backward).
    return pl.pallas_call(
        _affine_kernel,
        out_shape=jax.ShapeDtypeStruct((rows, lanes), x2.dtype),
        grid_spec=pltpu.PrefetchScalarGridSpec(
            num_scalar_prefetch=0,
            grid=grid,
            in_specs=[
                pl.BlockSpec((r_blk, l_blk), lambda i, j: (i, j)),  # x slab
                param_spec,                                         # scale
                param_spec,                                         # bias
            ],
            out_specs=pl.BlockSpec((r_blk, l_blk), lambda i, j: (i, j)),
        ),
        compiler_params=pltpu.CompilerParams(**cp_kwargs),
        cost_estimate=cost,
    )(x2, scale2, bias2)


def actnorm2d_forward(x, log_scale, bias):
    """Pallas ActNorm2dFlow forward. x: (N, C, H, W). Returns (out, logdet)."""
    N, C, H, W = x.shape
    HW = H * W

    # Hoisted param prep (tiny arrays, f32 for accuracy).
    scale_c = jnp.exp(log_scale.astype(jnp.float32)).reshape(C)
    bias_c = bias.astype(jnp.float32).reshape(C)

    # logdet is a C-element reduction -> compute in the wrapper (keeps the grid
    # free of resident outputs so both axes can stay "parallel").
    logdet = (jnp.sum(log_scale.astype(jnp.float32)) * jnp.float32(HW)).reshape(1)

    if HW >= 128:
        # View A: (N*C, H*W) with per-row params. Free, layout-preserving view;
        # rows fill the sublane axis, HW gives lane-dense (>=128) stores.
        x2 = x.reshape(N * C, HW)
        scale2 = jnp.broadcast_to(scale_c[None, :, None], (N, C, 1)).reshape(N * C, 1)
        bias2 = jnp.broadcast_to(bias_c[None, :, None], (N, C, 1)).reshape(N * C, 1)
        out2 = _affine_pallas(x2, scale2, bias2, per_row=True)
    else:
        # View B (HW < 128, deep MaCow scales): fold C*H*W into the lane axis
        # so output stores stay lane-dense; per-channel params become a small
        # lane-pattern vector (each channel's value repeated HW times).
        x2 = x.reshape(N, C * HW)
        scale2 = jnp.repeat(scale_c, HW).reshape(1, C * HW)
        bias2 = jnp.repeat(bias_c, HW).reshape(1, C * HW)
        out2 = _affine_pallas(x2, scale2, bias2, per_row=False)

    return out2.reshape(N, C, H, W), logdet


def actnorm2d_init(x, log_scale, bias, init_scale=1.0):
    """Data-dependent init (mirrors ActNorm2dFlow.init). Plain JAX glue (one-time)."""
    C = log_scale.shape[0]
    out = x * jnp.exp(log_scale.reshape(1, C, 1, 1)) + bias.reshape(1, C, 1, 1)
    out_c = jnp.transpose(out, (1, 0, 2, 3)).reshape(C, -1)
    mean = jnp.mean(out_c, axis=1)
    std = jnp.std(out_c, axis=1, ddof=1)  # torch.std is unbiased
    inv_stdv = init_scale / (std + 1e-6)
    new_log_scale = log_scale + jnp.log(inv_stdv).reshape(C, 1, 1)
    new_bias = (bias - mean.reshape(C, 1, 1)) * inv_stdv.reshape(C, 1, 1)
    return new_log_scale, new_bias


def _reference_forward(x, log_scale, bias):
    """Pure-JAX reference of the PyTorch forward (after init)."""
    N, C, H, W = x.shape
    out = x * jnp.exp(log_scale.reshape(1, C, 1, 1)) + bias.reshape(1, C, 1, 1)
    logdet = jnp.sum(log_scale, axis=0).squeeze(1) * (H * W)  # shape (1,)
    return out, logdet


if __name__ == "__main__":
    key = jax.random.PRNGKey(0)
    k_x, k_ls = jax.random.split(key)

    N, C, H, W = 2, 4, 16, 16
    x = jax.random.normal(k_x, (N, C, H, W), dtype=jnp.float32) * 2.0 + 0.5

    # Parameter init mirroring reset_parameters(): log_scale ~ N(0, 0.05), bias = 0.
    log_scale = 0.05 * jax.random.normal(k_ls, (C, 1, 1), dtype=jnp.float32)
    bias = jnp.zeros((C, 1, 1), dtype=jnp.float32)

    # First-call semantics: data-dependent init (initialized buffer == 0), then forward.
    log_scale, bias = actnorm2d_init(x, log_scale, bias)

    out, logdet = actnorm2d_forward(x, log_scale, bias)
    out = jax.block_until_ready(out)
    logdet = jax.block_until_ready(logdet)

    out_ref, logdet_ref = _reference_forward(x, log_scale, bias)

    assert out.shape == (N, C, H, W)
    assert logdet.shape == (1,)
    assert jnp.allclose(out, out_ref, atol=1e-5, rtol=1e-5)
    assert jnp.allclose(logdet, logdet_ref, atol=1e-4, rtol=1e-5)

    # Also exercise the HW < 128 lane-folded path (view B) for correctness.
    H2 = W2 = 8
    x_small = jax.random.normal(key, (N, C, H2, W2), dtype=jnp.float32)
    out_s, logdet_s = actnorm2d_forward(x_small, log_scale, bias)
    out_s = jax.block_until_ready(out_s)
    out_s_ref, logdet_s_ref = _reference_forward(x_small, log_scale, bias)
    assert jnp.allclose(out_s, out_s_ref, atol=1e-5, rtol=1e-5)
    assert jnp.allclose(logdet_s, logdet_s_ref, atol=1e-4, rtol=1e-5)

    print("KERNEL_OK")
</pallas_src>

<mosaic_0001>
module attributes {stable_mosaic.version = 11 : i64} {
  func.func @_affine_kernel(%arg0: i32, %arg1: i32, %arg2: memref<8x256xf32, #tpu.memory_space<vmem>>, %arg3: memref<8x1xf32, #tpu.memory_space<vmem>>, %arg4: memref<8x1xf32, #tpu.memory_space<vmem>>, %arg5: memref<8x256xf32, #tpu.memory_space<vmem>>) attributes {dimension_semantics = [#tpu.dimension_semantics<parallel>, #tpu.dimension_semantics<parallel>], iteration_bounds = array<i64: 1, 1>, scalar_prefetch = 0 : i64, scratch_operands = 0 : i64, tpu.core_type = #tpu.core_type<tc>, window_params = [{transform_indices = @transform_0, window_bounds = array<i64: 8, 256>}, {transform_indices = @transform_1, window_bounds = array<i64: 8, 1>}, {transform_indices = @transform_2, window_bounds = array<i64: 8, 1>}, {transform_indices = @transform_3, window_bounds = array<i64: 8, 256>}]} {
    %c0 = arith.constant 0 : index
    %c0_0 = arith.constant 0 : index
    %0 = vector.load %arg2[%c0, %c0_0] : memref<8x256xf32, #tpu.memory_space<vmem>>, vector<8x256xf32>
    %c0_1 = arith.constant 0 : index
    %c0_2 = arith.constant 0 : index
    %1 = vector.load %arg3[%c0_1, %c0_2] : memref<8x1xf32, #tpu.memory_space<vmem>>, vector<8x1xf32>
    %2 = vector.broadcast %1 : vector<8x1xf32> to vector<8x256xf32>
    %3 = arith.mulf %0, %2 : vector<8x256xf32>
    %c0_3 = arith.constant 0 : index
    %c0_4 = arith.constant 0 : index
    %4 = vector.load %arg4[%c0_3, %c0_4] : memref<8x1xf32, #tpu.memory_space<vmem>>, vector<8x1xf32>
    %5 = vector.broadcast %4 : vector<8x1xf32> to vector<8x256xf32>
    %6 = arith.addf %3, %5 : vector<8x256xf32>
    %c0_5 = arith.constant 0 : index
    %c0_6 = arith.constant 0 : index
    %7 = vector.load %arg5[%c0_5, %c0_6] : memref<8x256xf32, #tpu.memory_space<vmem>>, vector<8x256xf32>
    tpu.vector_store %arg5[%c0_5, %c0_6], %6 {strides = array<i32>} : memref<8x256xf32, #tpu.memory_space<vmem>>, vector<8x256xf32>,
    return
  }
  func.func @transform_0(%arg0: i32, %arg1: i32) -> (i32, i32) {
    %c0_i32 = arith.constant 0 : i32
    return %arg0, %arg1 : i32, i32
  }
  func.func @transform_1(%arg0: i32, %arg1: i32) -> (i32, i32) {
    %c0_i32 = arith.constant 0 : i32
    %c0_i32_0 = arith.constant 0 : i32
    return %arg0, %c0_i32 : i32, i32
  }
  func.func @transform_2(%arg0: i32, %arg1: i32) -> (i32, i32) {
    %c0_i32 = arith.constant 0 : i32
    %c0_i32_0 = arith.constant 0 : i32
    return %arg0, %c0_i32 : i32, i32
  }
  func.func @transform_3(%arg0: i32, %arg1: i32) -> (i32, i32) {
    %c0_i32 = arith.constant 0 : i32
    return %arg0, %arg1 : i32, i32
  }
}

</mosaic_0001>

<bundles_post_ra>
// kernel: tpu_custom_call.1
= control target key start
LH: loop header
LB: loop body
LE: loop exit
PB: predicated region body
PF: predicated region fallthrough
CT: control target
= control target key end

     0   :  { %s117_s0 = inlined_call_operand.vmem [shape: f32[8,256], index: 0, kind: input, shape index: {}]   ;;  %s118_s1 = inlined_call_operand.vmem [shape: f32[8,1], index: 1, kind: input, shape index: {}]   ;;  %s119_s2 = inlined_call_operand.vmem [shape: f32[8,1], index: 2, kind: input, shape index: {}]   ;;  %s120_s3 = inlined_call_operand.hbm [shape: f32[8,256], index: 3, kind: output, shape index: {}]  }
   0x1   :  { %v17_v0 = vld [vmem:[%s118_s1] sm:$0xff] }
   0x2   :  { %8 = vsyncpa [#allocation3], 0  ;;  %v80_v1 = vmov 0   ;;  %v25_v2 = vld [vmem:[%s119_s2] sm:$0xff]  ;;  %v16_v5 = vld [vmem:[%s117_s0 + $0x8] sm:$0xff]  ;;  %s81_s1 = smov [#allocation2]  }
   0x3   :  { %53 = vset.pattern.permute.xlu0 %v80_v1  ;;  %v15_v4 = vld [vmem:[%s117_s0] sm:$0xff]  ;;  %s40_s20 = sshll.u32 %s81_s1, 4  ;;  %s42_s23 = sshll.u32 %s120_s3, 4  ;;  %s41_s20 = int_to_ptr.vmem [resolvable:$true] %s40_s20  ;;  %s43_s23 = int_to_ptr.hbm [resolvable:$true] %s42_s23 }
   0x4   :  { %20 = vperm.xlu0 %53, %v17_v0  }
   0xc   :  { %28 = vperm.xlu0 %53, %v25_v2  }
  0x76   :  { %v21_v3 = vpop.permute.xlu0 %20 }
  0x77   :  { %v23_v6 = vmul.f32 %v21_v3, %v15_v4  ;;  %v24_v7 = vmul.f32 %v21_v3, %v16_v5 }
  0x7e   :  { %v29_v8 = vpop.permute.xlu0 %28 }
  0x7f   :  { %v31_v9 = vadd.f32 %v29_v8, %v23_v6  ;;  %v32_v10 = vadd.f32 %v29_v8, %v24_v7 }
  0x81   :  { %33 = vst [vmem:[#allocation2] sm:$0xff] %v31_v9 }
  0x82   :  { %34 = vst [vmem:[#allocation2 + $0x8] sm:$0xff] %v32_v10 }
  0x83   :  { %45 = dma.vmem_to_hbm [thread:$0]  %s41_s20, 256, %s43_s23, [#allocation3]  }
  0x84   :  { %78 = dma.done.wait [#allocation3], 256  }
  0x85   :  { %79 = vsyncadd [#allocation3], 4294967040 }
  0x86   :  { %50 = vsyncpa [#allocation3], 1 }

</bundles_post_ra>
